<compile_context>
chip_gen: v7x
topology: tpu7x:2x2x1
jax: 0.10.0
libtpu: 0.0.40
codegen_flags: <defaults>
</compile_context>

<pallas_src>
import jax
import jax.numpy as jnp
from jax.experimental import pallas as pl
from jax.experimental.pallas import tpu as pltpu


def _residual_layer_kernel(x_ref, w1_ref, b1_ref, w2_ref, b2_ref, o_ref):
    # Keep matmul operands in their native dtype (bf16 hits the fast MXU path);
    # accumulate in f32 via preferred_element_type.
    x = x_ref[...]

    # dense_1: linear + swish (bias/activation in f32)
    h = jnp.dot(x, w1_ref[...], preferred_element_type=jnp.float32) + b1_ref[...]
    h = h * jax.nn.sigmoid(h)

    # dense_2: linear + swish
    y = (
        jnp.dot(h.astype(w2_ref.dtype), w2_ref[...],
                preferred_element_type=jnp.float32)
        + b2_ref[...]
    )
    y = y * jax.nn.sigmoid(y)

    # residual connection (f32 add, cast back to output dtype)
    o_ref[...] = (x.astype(jnp.float32) + y).astype(o_ref.dtype)


def _round_up(v, m):
    return ((v + m - 1) // m) * m


def residual_layer(x, w1, b1, w2, b2, *, tile_rows=512):
    """x: [N, units]; w*: [units, units] (in x out); b*: [units] -> [N, units]."""
    n, units = x.shape

    # Lane-dense padding: units -> multiple of 128.
    units_p = _round_up(units, 128)
    # Row tile: multiple of 8 (sublane), no larger than the (padded) row count.
    tile = min(_round_up(tile_rows, 8), max(_round_up(n, 8), 8))
    n_p = _round_up(n, tile)

    pad_u = units_p - units
    pad_n = n_p - n

    if pad_u:
        w1 = jnp.pad(w1, ((0, pad_u), (0, pad_u)))
        w2 = jnp.pad(w2, ((0, pad_u), (0, pad_u)))
        b1 = jnp.pad(b1, (0, pad_u))
        b2 = jnp.pad(b2, (0, pad_u))
    x_p = jnp.pad(x, ((0, pad_n), (0, pad_u))) if (pad_n or pad_u) else x

    b1_2d = b1.reshape(1, units_p).astype(jnp.float32)
    b2_2d = b2.reshape(1, units_p).astype(jnp.float32)

    grid = (n_p // tile,)

    # Explicit VMEM budget: double-buffered x/out tiles, resident weights
    # (x2 allowance), biases, f32 intermediates; 1.5x + 2 MiB headroom,
    # floored at 16 MiB, capped at 64 MiB (safe on v7x).
    xb = x.dtype.itemsize
    wb = w1.dtype.itemsize
    weights_bytes = 2 * units_p * units_p * wb * 2
    io_bytes = 2 * tile * units_p * xb * 2
    scratch_bytes = 4 * tile * units_p * 4
    bias_bytes = 2 * 2 * units_p * 4
    est = weights_bytes + io_bytes + scratch_bytes + bias_bytes
    vmem_limit = min(64 << 20, max(16 << 20, int(1.5 * est) + (2 << 20)))

    out_p = pl.pallas_call(
        _residual_layer_kernel,
        out_shape=jax.ShapeDtypeStruct((n_p, units_p), x.dtype),
        grid_spec=pltpu.PrefetchScalarGridSpec(
            num_scalar_prefetch=0,
            grid=grid,
            in_specs=[
                pl.BlockSpec((tile, units_p), lambda i: (i, 0)),        # x tile
                pl.BlockSpec((units_p, units_p), lambda i: (0, 0)),     # W1 (resident)
                pl.BlockSpec((1, units_p), lambda i: (0, 0)),           # b1
                pl.BlockSpec((units_p, units_p), lambda i: (0, 0)),     # W2 (resident)
                pl.BlockSpec((1, units_p), lambda i: (0, 0)),           # b2
            ],
            out_specs=pl.BlockSpec((tile, units_p), lambda i: (i, 0)),
        ),
        compiler_params=pltpu.CompilerParams(
            dimension_semantics=("parallel",),
            vmem_limit_bytes=vmem_limit,
        ),
    )(x_p, w1, b1_2d, w2, b2_2d)

    if pad_n or pad_u:
        out_p = out_p[:n, :units]
    return out_p


def residual_layer_ref(x, w1, b1, w2, b2):
    """Pure-JAX reference (mirrors the PyTorch forward)."""
    def dense(v, w, b):
        y = v @ w + b
        return y * jax.nn.sigmoid(y)  # swish

    return x + dense(dense(x, w1, b1), w2, b2)


if __name__ == "__main__":
    key = jax.random.PRNGKey(0)
    k_x, k_w1, k_b1, k_w2, k_b2, k_x2 = jax.random.split(key, 6)

    # Small shapes consistent with the module: 16 edge-messages, hidden=32.
    N, UNITS = 16, 32
    x = jax.random.normal(k_x, (N, UNITS), dtype=jnp.float32)
    w1 = jax.random.normal(k_w1, (UNITS, UNITS), dtype=jnp.float32) * 0.1
    b1 = jax.random.normal(k_b1, (UNITS,), dtype=jnp.float32) * 0.1
    w2 = jax.random.normal(k_w2, (UNITS, UNITS), dtype=jnp.float32) * 0.1
    b2 = jax.random.normal(k_b2, (UNITS,), dtype=jnp.float32) * 0.1

    out = jax.block_until_ready(residual_layer(x, w1, b1, w2, b2))
    ref = residual_layer_ref(x, w1, b1, w2, b2)
    assert out.shape == (N, UNITS)
    assert jnp.allclose(out, ref, atol=1e-5, rtol=1e-5), "mismatch vs reference (case 1)"

    # Second case: ragged N (exercises row padding + multi-step grid) with
    # lane-dense units=128.
    N2, UNITS2 = 300, 128
    x2 = jax.random.normal(k_x2, (N2, UNITS2), dtype=jnp.float32)
    w1b = jax.random.normal(k_w1, (UNITS2, UNITS2), dtype=jnp.float32) * 0.05
    b1b = jax.random.normal(k_b1, (UNITS2,), dtype=jnp.float32) * 0.05
    w2b = jax.random.normal(k_w2, (UNITS2, UNITS2), dtype=jnp.float32) * 0.05
    b2b = jax.random.normal(k_b2, (UNITS2,), dtype=jnp.float32) * 0.05

    out2 = jax.block_until_ready(
        residual_layer(x2, w1b, b1b, w2b, b2b, tile_rows=128)
    )
    ref2 = residual_layer_ref(x2, w1b, b1b, w2b, b2b)
    assert out2.shape == (N2, UNITS2)
    assert jnp.allclose(out2, ref2, atol=1e-4, rtol=1e-4), "mismatch vs reference (case 2)"

    print("KERNEL_OK")
</pallas_src>

<mosaic_0001>
module attributes {stable_mosaic.version = 11 : i64} {
  func.func @_residual_layer_kernel(%arg0: i32, %arg1: memref<16x128xf32, #tpu.memory_space<vmem>>, %arg2: memref<128x128xf32, #tpu.memory_space<vmem>>, %arg3: memref<1x128xf32, #tpu.memory_space<vmem>>, %arg4: memref<128x128xf32, #tpu.memory_space<vmem>>, %arg5: memref<1x128xf32, #tpu.memory_space<vmem>>, %arg6: memref<16x128xf32, #tpu.memory_space<vmem>>) attributes {dimension_semantics = [#tpu.dimension_semantics<parallel>], iteration_bounds = array<i64: 1>, scalar_prefetch = 0 : i64, scratch_operands = 0 : i64, tpu.core_type = #tpu.core_type<tc>, window_params = [{transform_indices = @transform_0, window_bounds = array<i64: 16, 128>}, {pipeline_mode = #tpu.pipeline_mode<synchronous>, transform_indices = @transform_1, window_bounds = array<i64: 128, 128>}, {pipeline_mode = #tpu.pipeline_mode<synchronous>, transform_indices = @transform_2, window_bounds = array<i64: 1, 128>}, {pipeline_mode = #tpu.pipeline_mode<synchronous>, transform_indices = @transform_3, window_bounds = array<i64: 128, 128>}, {pipeline_mode = #tpu.pipeline_mode<synchronous>, transform_indices = @transform_4, window_bounds = array<i64: 1, 128>}, {transform_indices = @transform_5, window_bounds = array<i64: 16, 128>}]} {
    %c0 = arith.constant 0 : index
    %c0_0 = arith.constant 0 : index
    %0 = vector.load %arg1[%c0, %c0_0] : memref<16x128xf32, #tpu.memory_space<vmem>>, vector<16x128xf32>
    %c0_1 = arith.constant 0 : index
    %c0_2 = arith.constant 0 : index
    %1 = vector.load %arg2[%c0_1, %c0_2] : memref<128x128xf32, #tpu.memory_space<vmem>>, vector<128x128xf32>
    %cst = arith.constant dense<0.000000e+00> : vector<16x128xf32>
    %2 = tpu.matmul %0, %1, %cst {dimension_numbers = #tpu.dot_dimension_numbers<[1], [0], [0], [1], [0, 0, 1, 1], [], []>} : vector<16x128xf32>, vector<128x128xf32>, vector<16x128xf32> -> vector<16x128xf32>
    %c0_3 = arith.constant 0 : index
    %c0_4 = arith.constant 0 : index
    %3 = vector.load %arg3[%c0_3, %c0_4] : memref<1x128xf32, #tpu.memory_space<vmem>>, vector<1x128xf32>
    %4 = vector.broadcast %3 : vector<1x128xf32> to vector<16x128xf32>
    %5 = arith.addf %2, %4 : vector<16x128xf32>
    %6 = arith.negf %5 : vector<16x128xf32>
    %7 = math.exp %6 : vector<16x128xf32>
    %cst_5 = arith.constant 1.000000e+00 : f32
    %8 = vector.broadcast %cst_5 : f32 to vector<16x128xf32>
    %9 = arith.addf %8, %7 : vector<16x128xf32>
    %10 = arith.divf %8, %9 : vector<16x128xf32>
    %11 = arith.mulf %5, %10 : vector<16x128xf32>
    %c0_6 = arith.constant 0 : index
    %c0_7 = arith.constant 0 : index
    %12 = vector.load %arg4[%c0_6, %c0_7] : memref<128x128xf32, #tpu.memory_space<vmem>>, vector<128x128xf32>
    %cst_8 = arith.constant dense<0.000000e+00> : vector<16x128xf32>
    %13 = tpu.matmul %11, %12, %cst_8 {dimension_numbers = #tpu.dot_dimension_numbers<[1], [0], [0], [1], [0, 0, 1, 1], [], []>} : vector<16x128xf32>, vector<128x128xf32>, vector<16x128xf32> -> vector<16x128xf32>
    %c0_9 = arith.constant 0 : index
    %c0_10 = arith.constant 0 : index
    %14 = vector.load %arg5[%c0_9, %c0_10] : memref<1x128xf32, #tpu.memory_space<vmem>>, vector<1x128xf32>
    %15 = vector.broadcast %14 : vector<1x128xf32> to vector<16x128xf32>
    %16 = arith.addf %13, %15 : vector<16x128xf32>
    %17 = arith.negf %16 : vector<16x128xf32>
    %18 = math.exp %17 : vector<16x128xf32>
    %cst_11 = arith.constant 1.000000e+00 : f32
    %19 = vector.broadcast %cst_11 : f32 to vector<16x128xf32>
    %20 = arith.addf %19, %18 : vector<16x128xf32>
    %21 = arith.divf %19, %20 : vector<16x128xf32>
    %22 = arith.mulf %16, %21 : vector<16x128xf32>
    %23 = arith.addf %0, %22 : vector<16x128xf32>
    %c0_12 = arith.constant 0 : index
    %c0_13 = arith.constant 0 : index
    %24 = vector.load %arg6[%c0_12, %c0_13] : memref<16x128xf32, #tpu.memory_space<vmem>>, vector<16x128xf32>
    tpu.vector_store %arg6[%c0_12, %c0_13], %23 {strides = array<i32>} : memref<16x128xf32, #tpu.memory_space<vmem>>, vector<16x128xf32>,
    return
  }
  func.func @transform_0(%arg0: i32) -> (i32, i32) {
    %c0_i32 = arith.constant 0 : i32
    %c0_i32_0 = arith.constant 0 : i32
    return %arg0, %c0_i32 : i32, i32
  }
  func.func @transform_1(%arg0: i32) -> (i32, i32) {
    %c0_i32 = arith.constant 0 : i32
    %c0_i32_0 = arith.constant 0 : i32
    %c0_i32_1 = arith.constant 0 : i32
    return %c0_i32, %c0_i32_0 : i32, i32
  }
  func.func @transform_2(%arg0: i32) -> (i32, i32) {
    %c0_i32 = arith.constant 0 : i32
    %c0_i32_0 = arith.constant 0 : i32
    %c0_i32_1 = arith.constant 0 : i32
    return %c0_i32, %c0_i32_0 : i32, i32
  }
  func.func @transform_3(%arg0: i32) -> (i32, i32) {
    %c0_i32 = arith.constant 0 : i32
    %c0_i32_0 = arith.constant 0 : i32
    %c0_i32_1 = arith.constant 0 : i32
    return %c0_i32, %c0_i32_0 : i32, i32
  }
  func.func @transform_4(%arg0: i32) -> (i32, i32) {
    %c0_i32 = arith.constant 0 : i32
    %c0_i32_0 = arith.constant 0 : i32
    %c0_i32_1 = arith.constant 0 : i32
    return %c0_i32, %c0_i32_0 : i32, i32
  }
  func.func @transform_5(%arg0: i32) -> (i32, i32) {
    %c0_i32 = arith.constant 0 : i32
    %c0_i32_0 = arith.constant 0 : i32
    return %arg0, %c0_i32 : i32, i32
  }
}

</mosaic_0001>

<bundles_post_ra>
// kernel: tpu_custom_call.1
= control target key start
LH: loop header
LB: loop body
LE: loop exit
PB: predicated region body
PF: predicated region fallthrough
CT: control target
= control target key end

     0   :  { %10 = vsyncpa [#allocation3], 0  ;;  %s719_s0 = inlined_call_operand.hbm [shape: f32[16,128], index: 0, kind: input, shape index: {}]   ;;  %s720_s1 = inlined_call_operand.hbm [shape: f32[128,128], index: 1, kind: input, shape index: {}]   ;;  %s721_s2 = inlined_call_operand.vmem [shape: f32[1,128], index: 2, kind: input, shape index: {}]   ;;  %s722_s3 = inlined_call_operand.hbm [shape: f32[128,128], index: 3, kind: input, shape index: {}]   ;;  %s723_s4 = inlined_call_operand.vmem [shape: f32[1,128], index: 4, kind: input, shape index: {}]   ;;  %s724_s5 = inlined_call_operand.hbm [shape: f32[16,128], index: 5, kind: output, shape index: {}]  }
   0x1   :  { %11 = vsyncpa [#allocation6], 0 }
   0x2   :  { %12 = vsyncpa [#allocation4], 0  ;;  %s602_s18 = smov [#allocation5]   ;;  %s603_s20 = smov [#allocation2]  }
   0x3   :  { %s30_s19 = sshll.u32 %s602_s18, 4  ;;  %s18_s21 = sshll.u32 %s603_s20, 4  ;;  %s31_s19 = int_to_ptr.vmem [resolvable:$true] %s30_s19  ;;  %s638_s21 = int_to_ptr.vmem [resolvable:$true] %s18_s21 }
   0x4   :  { %s508_s24 = scalar_lea.hbm %s720_s1, 2048 }
   0x5   :  { %p509_p0 = scmp.ne.s32.totalorder %s720_s1, %s508_s24  ;;  %p512_p1 = scmp.lt.u32.totalorder %s508_s24, %s720_s1 }
   0x7   :  { %p514_p2 = pnand %p512_p1, %p509_p0 }
   0x9   :  { %517 = shalt.err (!%p514_p2)
}
   0xa   :  { %s518_s29 = scalar_lea.vmem %s31_s19, 2048  ;;  %p523_p4 = scmp.lt.s32.totalorder %s31_s19, %s31_s19 }
   0xb   :  { %p519_p3 = scmp.ne.s32.totalorder %s31_s19, %s518_s29  ;;  %p524_p5 = scmp.lt.s32.totalorder %s518_s29, %s518_s29 }
   0xd   :  { %p525_p6 = por %p524_p5, %p523_p4 }
   0xf   :  { %p526_p7 = pnand %p525_p6, %p519_p3 }
  0x11   :  { %529 = shalt.err (!%p526_p7)
}
  0x12   :  { %s604_s30 = smov 128   ;;  %s605_s6 = smov 8  }
  0x13   :  { %36 = dma.hbm_to_vmem [thread:$0]  %s720_s1, 2048, %s31_s19, [#allocation6], %s604_s30, %s604_s30, %s605_s6  }
  0x14   :  { %s530_s11 = scalar_lea.hbm %s719_s0, 256 }
  0x15   :  { %p531_p8 = scmp.ne.s32.totalorder %s719_s0, %s530_s11  ;;  %p534_p9 = scmp.lt.u32.totalorder %s530_s11, %s719_s0 }
  0x17   :  { %p536_p10 = pnand %p534_p9, %p531_p8 }
  0x19   :  { %539 = shalt.err (!%p536_p10)
}
  0x1a   :  { %s540_s16 = scalar_lea.vmem %s638_s21, 256  ;;  %p545_p12 = scmp.lt.s32.totalorder %s638_s21, %s638_s21 }
  0x1b   :  { %p541_p11 = scmp.ne.s32.totalorder %s638_s21, %s540_s16  ;;  %p546_p13 = scmp.lt.s32.totalorder %s540_s16, %s540_s16 }
  0x1d   :  { %p547_p0 = por %p546_p13, %p545_p12 }
  0x1f   :  { %p548_p1 = pnand %p547_p0, %p541_p11 }
  0x21   :  { %551 = shalt.err (!%p548_p1)
}
  0x22   :  { %24 = dma.hbm_to_vmem [thread:$0]  %s719_s0, 256, %s638_s21, [#allocation3], %s604_s30, %s604_s30, %s605_s6  }
  0x23   :  { %s606_s18 = smov [#allocation7]   ;;  %s552_s23 = scalar_lea.hbm %s722_s3, 2048 }
  0x24   :  { %s44_s19 = sshll.u32 %s606_s18, 4  ;;  %p553_p2 = scmp.ne.s32.totalorder %s722_s3, %s552_s23  ;;  %s45_s19 = int_to_ptr.vmem [resolvable:$true] %s44_s19 }
  0x25   :  { %p556_p3 = scmp.lt.u32.totalorder %s552_s23, %s722_s3 }
  0x27   :  { %p558_p4 = pnand %p556_p3, %p553_p2 }
  0x29   :  { %561 = shalt.err (!%p558_p4)
}
  0x2a   :  { %s562_s28 = scalar_lea.vmem %s45_s19, 2048  ;;  %p567_p6 = scmp.lt.s32.totalorder %s45_s19, %s45_s19 }
  0x2b   :  { %p563_p5 = scmp.ne.s32.totalorder %s45_s19, %s562_s28  ;;  %p568_p7 = scmp.lt.s32.totalorder %s562_s28, %s562_s28 }
  0x2d   :  { %p569_p8 = por %p568_p7, %p567_p6 }
  0x2f   :  { %p570_p9 = pnand %p569_p8, %p563_p5 }
  0x31   :  { %573 = shalt.err (!%p570_p9)
}
  0x32   :  { %50 = dma.hbm_to_vmem [thread:$0]  %s722_s3, 2048, %s45_s19, [#allocation6], %s604_s30, %s604_s30, %s605_s6  }
  0x33   :  { %596 = dma.done.wait [#allocation3], 256  }
  0x34   :  { %597 = vsyncadd [#allocation3], 4294967040 }
  0x35   :  { %598 = dma.done.wait [#allocation6], 4096  }
  0x36   :  { %599 = vsyncadd [#allocation6], 4294963200  ;;  %v64_v0 = vld [vmem:[#allocation5] sm:$0xff]  ;;  %v65_v1 = vld [vmem:[#allocation5 + $0x8] sm:$0xff]  ;;  %s607_s8 = smov [#allocation8]  }
  0x37   :  { %v66_v2 = vld [vmem:[#allocation5 + $0x10] sm:$0xff]  ;;  %v422_v3 = vpack.c.bf16 %v65_v1, %v64_v0  ;;  %v67_v4 = vld [vmem:[#allocation5 + $0x18] sm:$0xff]  ;;  %v68_v6 = vld [vmem:[#allocation5 + $0x20] sm:$0xff]  ;;  %s297_s9 = sshll.u32 %s607_s8, 4  ;;  %s298_s9 = int_to_ptr.vmem [resolvable:$true] %s297_s9 }
  0x38   :  { %v426_v5 = vpack.c.bf16 %v67_v4, %v66_v2  ;;  %v69_v7 = vld [vmem:[#allocation5 + $0x28] sm:$0xff]  ;;  %v690_v9 = vld [vmem:[#allocation2] sm:$0xff]  ;;  %v71_v11 = vld [vmem:[#allocation5 + $0x38] sm:$0xff]  ;;  %p579_p11 = scmp.lt.s32.totalorder %s298_s9, %s298_s9 }
  0x39   :  { %423 = vmatprep.subr.bf16.mxu0 %v422_v3  ;;  %v430_v8 = vpack.c.bf16 %v69_v7, %v68_v6  ;;  %v70_v10 = vld [vmem:[#allocation5 + $0x30] sm:$0xff]  ;;  %384 = vmatprep.mubr.f32.mxu0 %v690_v9  ;;  %v72_v13 = vld [vmem:[#allocation5 + $0x40] sm:$0xff]  ;;  %v73_v14 = vld [vmem:[#allocation5 + $0x48] sm:$0xff] }
  0x3a   :  { %425 = vmatpush3.bf16.msra.mxu0 %v422_v3  ;;  %v434_v12 = vpack.c.bf16 %v71_v11, %v70_v10  ;;  %v438_v15 = vpack.c.bf16 %v73_v14, %v72_v13  ;;  %v74_v16 = vld [vmem:[#allocation5 + $0x50] sm:$0xff]  ;;  %v75_v17 = vld [vmem:[#allocation5 + $0x58] sm:$0xff]  ;;  %v76_v19 = vld [vmem:[#allocation5 + $0x60] sm:$0xff] }
  0x3b   :  { %427 = vmatprep.subr.bf16.mxu0 %v426_v5  ;;  %v442_v18 = vpack.c.bf16 %v75_v17, %v74_v16  ;;  %v77_v20 = vld [vmem:[#allocation5 + $0x68] sm:$0xff]  ;;  %v78_v22 = vld [vmem:[#allocation5 + $0x70] sm:$0xff]  ;;  %v79_v23 = vld [vmem:[#allocation5 + $0x78] sm:$0xff] }
  0x3c   :  { %v446_v21 = vpack.c.bf16 %v77_v20, %v76_v19  ;;  %v450_v24 = vpack.c.bf16 %v79_v23, %v78_v22  ;;  %v693_v25 = vld [vmem:[#allocation2 + $0x8] sm:$0xff]  ;;  %v176_v26 = vld [vmem:[#allocation7] sm:$0xff]  ;;  %v177_v27 = vld [vmem:[#allocation7 + $0x8] sm:$0xff] }
  0x3d   :  { %v454_v28 = vpack.c.bf16 %v177_v27, %v176_v26  ;;  %v178_v29 = vld [vmem:[#allocation7 + $0x10] sm:$0xff]  ;;  %v179_v30 = vld [vmem:[#allocation7 + $0x18] sm:$0xff]  ;;  %v180_v32 = vld [vmem:[#allocation7 + $0x20] sm:$0xff] }
  0x3e   :  { %429 = vmatpush3.bf16.msra.mxu0 %v426_v5  ;;  %v458_v31 = vpack.c.bf16 %v179_v30, %v178_v29  ;;  %v181_v33 = vld [vmem:[#allocation7 + $0x28] sm:$0xff]  ;;  %v182_v35 = vld [vmem:[#allocation7 + $0x30] sm:$0xff]  ;;  %v183_v36 = vld [vmem:[#allocation7 + $0x38] sm:$0xff] }
  0x3f   :  { %431 = vmatprep.subr.bf16.mxu0 %v430_v8  ;;  %455 = vmatprep.subr.bf16.mxu1 %v454_v28  ;;  %v462_v34 = vpack.c.bf16 %v181_v33, %v180_v32  ;;  %v466_v37 = vpack.c.bf16 %v183_v36, %v182_v35  ;;  %v184_v38 = vld [vmem:[#allocation7 + $0x40] sm:$0xff]  ;;  %v185_v39 = vld [vmem:[#allocation7 + $0x48] sm:$0xff]  ;;  %v186_v41 = vld [vmem:[#allocation7 + $0x50] sm:$0xff] }
  0x40   :  { %457 = vmatpush3.bf16.msra.mxu1 %v454_v28  ;;  %v470_v40 = vpack.c.bf16 %v185_v39, %v184_v38  ;;  %v187_v42 = vld [vmem:[#allocation7 + $0x58] sm:$0xff]  ;;  %v188_v44 = vld [vmem:[#allocation7 + $0x60] sm:$0xff]  ;;  %v189_v45 = vld [vmem:[#allocation7 + $0x68] sm:$0xff] }
  0x41   :  { %459 = vmatprep.subr.bf16.mxu1 %v458_v31  ;;  %v474_v43 = vpack.c.bf16 %v187_v42, %v186_v41  ;;  %v478_v46 = vpack.c.bf16 %v189_v45, %v188_v44  ;;  %v190_v47 = vld [vmem:[#allocation7 + $0x70] sm:$0xff]  ;;  %v191_v48 = vld [vmem:[#allocation7 + $0x78] sm:$0xff] }
  0x42   :  { %433 = vmatpush3.bf16.msra.mxu0 %v430_v8  ;;  %v482_v49 = vpack.c.bf16 %v191_v48, %v190_v47  ;;  %v310_v50 = vld [vmem:[%s721_s2] ss:$0 sm:$0xff] }
  0x43   :  { %435 = vmatprep.subr.bf16.mxu0 %v434_v12  ;;  %v313_v1 = vld [vmem:[%s723_s4] ss:$0 sm:$0xff]  ;;  %s574_s4 = scalar_lea.vmem %s298_s9, 256 }
  0x44   :  { %461 = vmatpush3.bf16.msra.mxu1 %v458_v31  ;;  %p575_p10 = scmp.ne.s32.totalorder %s298_s9, %s574_s4  ;;  %p580_p12 = scmp.lt.s32.totalorder %s574_s4, %s574_s4 }
  0x45   :  { %463 = vmatprep.subr.bf16.mxu1 %v462_v34 }
  0x46   :  { %437 = vmatpush3.bf16.msra.mxu0 %v434_v12  ;;  %p581_p13 = por %p580_p12, %p579_p11 }
  0x47   :  { %439 = vmatprep.subr.bf16.mxu0 %v438_v15 }
  0x48   :  { %465 = vmatpush3.bf16.msra.mxu1 %v462_v34  ;;  %p582_p0 = pnand %p581_p13, %p575_p10 }
  0x49   :  { %467 = vmatprep.subr.bf16.mxu1 %v466_v37 }
  0x4a   :  { %441 = vmatpush3.bf16.msra.mxu0 %v438_v15 }
  0x4b   :  { %443 = vmatprep.subr.bf16.mxu0 %v442_v18 }
  0x4c   :  { %469 = vmatpush3.bf16.msra.mxu1 %v466_v37 }
  0x4d   :  { %471 = vmatprep.subr.bf16.mxu1 %v470_v40 }
  0x4e   :  { %445 = vmatpush3.bf16.msra.mxu0 %v442_v18 }
  0x4f   :  { %447 = vmatprep.subr.bf16.mxu0 %v446_v21 }
  0x50   :  { %473 = vmatpush3.bf16.msra.mxu1 %v470_v40 }
  0x51   :  { %475 = vmatprep.subr.bf16.mxu1 %v474_v43 }
  0x52   :  { %449 = vmatpush3.bf16.msra.mxu0 %v446_v21 }
  0x53   :  { %451 = vmatprep.subr.bf16.mxu0 %v450_v24 }
  0x54   :  { %477 = vmatpush3.bf16.msra.mxu1 %v474_v43 }
  0x55   :  { %479 = vmatprep.subr.bf16.mxu1 %v478_v46 }
  0x56   :  { %453 = vmatpush3.bf16.msra.mxu0 %v450_v24 }
  0x58   :  { %481 = vmatpush3.bf16.msra.mxu1 %v478_v46 }
  0x59   :  { %385 = vmatmul.mubr.f32.vlgmr.msra.gmra.mrb[0].mxu0 %v693_v25  ;;  %483 = vmatprep.subr.bf16.mxu1 %v482_v49 }
  0x5c   :  { %485 = vmatpush3.bf16.msra.mxu1 %v482_v49 }
 0x12c   :  { %v386_v51 = vpop.f32.mrb[0].mxu0 }
 0x12d   :  { %v159_v52 = vadd.f32 %v386_v51, %v310_v50  ;;  %v153_v53 = vpop.f32.mrb[1].mxu0 }
 0x12e   :  { %v154_v54 = vadd.f32 %v310_v50, %v153_v53 }
 0x12f   :  { %v312_v55 = vmul.f32 -1.442695, %v159_v52 }
 0x130   :  { %v311_v56 = vmul.f32 -1.442695, %v154_v54 }
 0x131   :  { %492 = vpow2.f32 %v312_v55 }
 0x132   :  { %494 = vpow2.f32 %v311_v56 }
 0x13b   :  { %v493_v57 = vpop.eup %492 }
 0x13c   :  { %v495_v58 = vpop.eup %494  ;;  %v169_v59 = vadd.f32 1.0, %v493_v57 }
 0x13d   :  { %v168_v60 = vadd.f32 1.0, %v495_v58 }
 0x13e   :  { %496 = vrcp.f32 %v169_v59 }
 0x13f   :  { %498 = vrcp.f32 %v168_v60 }
 0x148   :  { %v497_v61 = vpop.eup %496 }
 0x149   :  { %v499_v62 = vpop.eup %498  ;;  %v175_v0 = vmul.f32 %v497_v61, %v159_v52 }
 0x14a   :  { %v174_v63 = vmul.f32 %v499_v62, %v154_v54 }
 0x14c   :  { %419 = vmatprep.mubr.f32.mxu1 %v174_v63 }
 0x14d   :  { %420 = vmatmul.mubr.f32.vlgmr.msra.gmra.mrb[0].mxu1 %v175_v0 }
 0x220   :  { %v421_v2 = vpop.f32.mrb[0].mxu1 }
 0x221   :  { %v271_v3 = vadd.f32 %v421_v2, %v313_v1  ;;  %v265_v4 = vpop.f32.mrb[1].mxu1 }
 0x222   :  { %v266_v5 = vadd.f32 %v313_v1, %v265_v4 }
 0x223   :  { %v315_v6 = vmul.f32 -1.442695, %v271_v3 }
 0x224   :  { %v314_v7 = vmul.f32 -1.442695, %v266_v5 }
 0x225   :  { %500 = vpow2.f32 %v315_v6 }
 0x226   :  { %502 = vpow2.f32 %v314_v7 }
 0x22f   :  { %v501_v8 = vpop.eup %500 }
 0x230   :  { %v503_v10 = vpop.eup %502  ;;  %v281_v11 = vadd.f32 1.0, %v501_v8 }
 0x231   :  { %v280_v12 = vadd.f32 1.0, %v503_v10 }
 0x232   :  { %504 = vrcp.f32 %v281_v11 }
 0x233   :  { %506 = vrcp.f32 %v280_v12 }
 0x23c   :  { %v505_v13 = vpop.eup %504 }
 0x23d   :  { %v507_v14 = vpop.eup %506  ;;  %v287_v15 = vmul.f32 %v505_v13, %v271_v3 }
 0x23e   :  { %v286_v16 = vmul.f32 %v507_v14, %v266_v5 }
 0x23f   :  { %v289_v17 = vadd.f32 %v287_v15, %v693_v25 }
 0x240   :  { %v288_v18 = vadd.f32 %v286_v16, %v690_v9 }
 0x241   :  { %291 = vst [vmem:[#allocation8 + $0x8] sm:$0xff] %v289_v17 }
 0x242   :  { %290 = vst [vmem:[#allocation8] sm:$0xff] %v288_v18 }
 0x243   :  { %585 = shalt.err (!%p582_p0)
}
 0x244   :  { %s586_s12 = scalar_lea.hbm %s724_s5, 256 }
 0x245   :  { %p587_p1 = scmp.ne.s32.totalorder %s724_s5, %s586_s12  ;;  %p590_p2 = scmp.lt.u32.totalorder %s586_s12, %s724_s5 }
 0x247   :  { %p592_p3 = pnand %p590_p2, %p587_p1 }
 0x249   :  { %595 = shalt.err (!%p592_p3)
}
 0x24a   :  { %303 = dma.vmem_to_hbm [thread:$0]  %s298_s9, 256, %s724_s5, [#allocation4], %s604_s30, %s604_s30, %s605_s6  }
 0x24b   :  { %600 = dma.done.wait [#allocation4], 256  }
 0x24c   :  { %601 = vsyncadd [#allocation4], 4294967040 }
 0x24d   :  { %307 = vsyncpa [#allocation3], 1 }
 0x24e   :  { %308 = vsyncpa [#allocation6], 1 }
 0x24f   :  { %309 = vsyncpa [#allocation4], 1 }

</bundles_post_ra>
